<compile_context>
chip_gen: v7x
topology: tpu7x:2x2x1
jax: 0.10.0
libtpu: 0.0.40
codegen_flags: <defaults>
</compile_context>

<pallas_src>
import functools

import jax
import jax.numpy as jnp
import numpy as np
from jax.experimental import pallas as pl
from jax.experimental.pallas import tpu as pltpu

EPS = 1e-5          # InstanceNorm eps
NEG_SLOPE = 0.01    # LeakyReLU negative_slope


def _round_up(x, m):
    return -(-x // m) * m


def _pick_vmem_limit_bytes():
    """Raise the scoped-VMEM cap on 128 MiB parts (v5e/v6e); keep the safe
    32 MiB default on 64 MiB parts (v7x) or if the query fails."""
    try:
        cap = int(pltpu.get_tpu_info().vmem_capacity_bytes)
    except Exception:
        cap = 0
    if cap >= 96 * 1024 * 1024:
        return 96 * 1024 * 1024
    return 32 * 1024 * 1024


_VMEM_LIMIT_BYTES = _pick_vmem_limit_bytes()


# ---------------------------------------------------------------------------
# Pallas kernel: implicit-GEMM conv + InstanceNorm + residual + LeakyReLU
# ---------------------------------------------------------------------------
def _fused_conv_in_kernel(x_ref, w_ref, gb_ref, m_ref, *rest, offsets, n_valid,
                          add_residual, apply_act):
    if add_residual:
        r_ref, o_ref = rest
    else:
        (o_ref,) = rest

    L = o_ref.shape[2]                              # multiple of 128
    x = x_ref[0]                                    # (ce, ls) bf16, 1 sample

    # In-VMEM im2col slab: one lane-shifted slice of the flattened padded image
    # per kernel tap, stacked along K.  Concatenate through f32 (sublane tile 8)
    # so the per-tap sublane offsets stay tile-aligned even for small ce, then
    # cast once to bf16 for the MXU.
    # TODO(synk): check via pl.lower_as_mlir whether the lane-unaligned shifts
    # lower to XLU rolls; if not, switch to explicit pltpu.roll shifts.
    pieces = [x[:, off:off + L] for off in offsets]
    if len(pieces) == 1:
        slab = pieces[0]
    else:
        slab = jnp.concatenate([p.astype(jnp.float32) for p in pieces],
                               axis=0).astype(jnp.bfloat16)     # (K, L)

    # Single big-K MXU GEMM (bf16 operands, f32 accumulation).
    acc = jnp.dot(w_ref[...], slab,
                  preferred_element_type=jnp.float32)           # (Cout, L)

    # InstanceNorm over valid spatial positions only (columns beyond wo per
    # output row / beyond ho*ws overall are padding garbage).  Single pass:
    # E[x^2] - mean^2 in f32 (adequate at these scales; switch to two-pass /
    # Welford if spatial tiling is added).
    mask = m_ref[...]                                # (1, L) 0/1 f32
    am = acc * mask
    inv_n = 1.0 / float(n_valid)
    s1 = jnp.sum(am, axis=1, keepdims=True)          # (Cout, 1)
    s2 = jnp.sum(am * acc, axis=1, keepdims=True)    # (Cout, 1)  sum of x^2
    mean = s1 * inv_n
    var = s2 * inv_n - mean * mean
    scale = gb_ref[:, 0:1] * jax.lax.rsqrt(var + EPS)   # gamma folded in
    shift = gb_ref[:, 1:2] - mean * scale               # beta  folded in
    y = acc * scale + shift

    if add_residual:
        y = y + r_ref[0].astype(jnp.float32)
    if apply_act:
        y = jnp.where(y >= 0, y, NEG_SLOPE * y)
    o_ref[0] = y.astype(o_ref.dtype)


# ---------------------------------------------------------------------------
# Wrapper glue: stride handling (space-to-depth), padding, pallas_call
# ---------------------------------------------------------------------------
def _space_to_depth(x, sh, sw):
    """(N,C,H,W) -> (N, sh*sw*C, ceil(H/sh), ceil(W/sw)); channel order (py,px,c)."""
    n, c, h, w = x.shape
    x = jnp.pad(x, ((0, 0), (0, 0), (0, (-h) % sh), (0, (-w) % sw)))
    hs, ws = x.shape[2] // sh, x.shape[3] // sw
    x = x.reshape(n, c, hs, sh, ws, sw)
    x = jnp.transpose(x, (0, 3, 5, 1, 2, 4))        # (n, sh, sw, c, hs, ws)
    return x.reshape(n, sh * sw * c, hs, ws)


def _repack_weights_s2d(w4, sh, sw):
    """(KH,KW,Cin,Cout) -> (T, Cout, sh*sw*Cin) taps for the space-to-depth image."""
    kh, kw, cin, cout = w4.shape
    tkh, tkw = -(-kh // sh), -(-kw // sw)
    wt = jnp.zeros((tkh, tkw, cout, sh * sw * cin), w4.dtype)
    for dy in range(kh):
        for dx in range(kw):
            p = (dy % sh) * sw + (dx % sw)
            wt = wt.at[dy // sh, dx // sw, :, p * cin:(p + 1) * cin].set(
                w4[dy, dx].T)
    return wt.reshape(tkh * tkw, cout, sh * sw * cin)


def fused_conv_in(x, w4, gamma, beta, *, stride=(1, 1), residual=None,
                  apply_act=True):
    """Conv(kh,kw,stride,'same' pad, no bias) + InstanceNorm(affine)
    [+ residual] [+ LeakyReLU], fused in one Pallas kernel.

    x: (N, Cin, H, W) NCHW; w4: (KH, KW, Cin, Cout);
    residual: (N, Cout, Ho, Wo) or None.  Returns (N, Cout, Ho, Wo) bf16.
    """
    n, cin, h, w_in = x.shape
    kh, kw, _, cout = w4.shape
    sh, sw = stride
    ph, pw = (kh - 1) // 2, (kw - 1) // 2
    ho = (h + 2 * ph - kh) // sh + 1
    wo = (w_in + 2 * pw - kw) // sw + 1

    xp = jnp.pad(x, ((0, 0), (0, 0), (ph, ph), (pw, pw)))
    if sh == 1 and sw == 1:
        xs = xp
        tkh, tkw = kh, kw
        w_flat = jnp.transpose(w4, (3, 0, 1, 2)).reshape(cout, kh * kw * cin)
    else:
        xs = _space_to_depth(xp, sh, sw)
        tkh, tkw = -(-kh // sh), -(-kw // sw)
        wt = _repack_weights_s2d(w4, sh, sw)                 # (T, cout, ce)
        w_flat = jnp.transpose(wt, (1, 0, 2)).reshape(cout, -1)

    _, ce, hs, ws = xs.shape
    offsets = tuple(oy * ws + ox for oy in range(tkh) for ox in range(tkw))
    K = tkh * tkw * ce

    # Lane-dense output slab: L is a multiple of 128 (unmasked vst, full MXU N).
    L = _round_up(ho * ws, 128)
    ls = _round_up(max(offsets[-1] + L, hs * ws), 128)
    x_flat = jnp.pad(xs.reshape(n, ce, hs * ws),
                     ((0, 0), (0, 0), (0, ls - hs * ws))).astype(jnp.bfloat16)

    # Valid-column mask for the InstanceNorm statistics.
    col = np.arange(L)
    valid = ((col < ho * ws) & (col % ws < wo)).astype(np.float32).reshape(1, L)

    inputs = [x_flat, w_flat.astype(jnp.bfloat16),
              jnp.stack([gamma, beta], axis=1).astype(jnp.float32),
              jnp.asarray(valid)]
    in_specs = [
        pl.BlockSpec((1, ce, ls), lambda i: (i, 0, 0)),
        pl.BlockSpec((cout, K), lambda i: (0, 0)),
        pl.BlockSpec((cout, 2), lambda i: (0, 0)),
        pl.BlockSpec((1, L), lambda i: (0, 0)),
    ]
    if residual is not None:
        assert residual.shape == (n, cout, ho, wo)
        r = jnp.pad(residual, ((0, 0), (0, 0), (0, 0), (0, ws - wo)))
        r = r.reshape(n, cout, ho * ws)
        r = jnp.pad(r, ((0, 0), (0, 0), (0, L - ho * ws))).astype(jnp.bfloat16)
        inputs.append(r)
        in_specs.append(pl.BlockSpec((1, cout, L), lambda i: (i, 0, 0)))

    kernel = functools.partial(
        _fused_conv_in_kernel, offsets=offsets, n_valid=ho * wo,
        add_residual=residual is not None, apply_act=apply_act)

    bytes_accessed = sum(int(np.prod(a.shape)) * a.dtype.itemsize
                         for a in inputs) + n * cout * L * 2
    cost = pl.CostEstimate(flops=2 * n * cout * K * L,
                           transcendentals=n * cout,
                           bytes_accessed=int(bytes_accessed))

    # TODO(synk): at production nnU-Net sizes, block several batch samples per
    # grid step (or add a spatial grid axis with a two-pass/Welford IN) to
    # amortize per-step overhead, and re-derive block sizes for v7x's 64 MiB
    # VMEM; at these shapes one sample fits comfortably in a single block.
    out = pl.pallas_call(
        kernel,
        out_shape=jax.ShapeDtypeStruct((n, cout, L), jnp.bfloat16),
        grid=(n,),
        in_specs=in_specs,
        out_specs=pl.BlockSpec((1, cout, L), lambda i: (i, 0, 0)),
        compiler_params=pltpu.CompilerParams(
            dimension_semantics=("parallel",),
            vmem_limit_bytes=_VMEM_LIMIT_BYTES),
        cost_estimate=cost,
    )(*inputs)
    # TODO(synk): keep activations in the padded (ws) layout between the convs
    # of a block to avoid the slice-then-repad HBM round trips at large sizes.
    out = out[:, :, :ho * ws].reshape(n, cout, ho, ws)
    return out[:, :, :, :wo]


# ---------------------------------------------------------------------------
# BasicResidualBlock / ResidualLayer (parameters + forward)
# ---------------------------------------------------------------------------
def _bf16_round(a):
    return a.astype(jnp.bfloat16).astype(jnp.float32)


def init_block(key, cin, cout, kernel_size=(3, 3), stride=None):
    kh, kw = kernel_size
    ks = jax.random.split(key, 12)
    p = {"stride": stride}
    p["w1"] = _bf16_round(0.1 * jax.random.normal(ks[0], (kh, kw, cin, cout), jnp.float32))
    p["b1"] = 0.1 * jax.random.normal(ks[1], (cout,), jnp.float32)   # reference only
    p["g1"] = 1.0 + 0.1 * jax.random.normal(ks[2], (cout,), jnp.float32)
    p["be1"] = 0.1 * jax.random.normal(ks[3], (cout,), jnp.float32)
    p["w2"] = _bf16_round(0.1 * jax.random.normal(ks[4], (kh, kw, cout, cout), jnp.float32))
    p["b2"] = 0.1 * jax.random.normal(ks[5], (cout,), jnp.float32)   # reference only
    p["g2"] = 1.0 + 0.1 * jax.random.normal(ks[6], (cout,), jnp.float32)
    p["be2"] = 0.1 * jax.random.normal(ks[7], (cout,), jnp.float32)
    needs_ds = (stride is not None and any(s != 1 for s in stride)) or cin != cout
    p["needs_ds"] = needs_ds
    if needs_ds:
        p["wd"] = _bf16_round(0.1 * jax.random.normal(ks[8], (1, 1, cin, cout), jnp.float32))
        p["gd"] = 1.0 + 0.1 * jax.random.normal(ks[9], (cout,), jnp.float32)
        p["bed"] = 0.1 * jax.random.normal(ks[10], (cout,), jnp.float32)
    return p


def block_forward(p, x):
    """x: (N,C,H,W) bf16. dropout p=0 -> Identity."""
    stride = tuple(p["stride"]) if p["stride"] is not None else (1, 1)
    # conv1 -> (Identity dropout) -> InstanceNorm -> LeakyReLU
    h = fused_conv_in(x, p["w1"], p["g1"], p["be1"], stride=stride,
                      apply_act=True)
    # skip branch: 1x1 conv (bias=False) + InstanceNorm, or identity
    if p["needs_ds"]:
        res = fused_conv_in(x, p["wd"], p["gd"], p["bed"], stride=stride,
                            apply_act=False)
    else:
        res = x
    # conv2 -> InstanceNorm -> +residual -> LeakyReLU
    return fused_conv_in(h, p["w2"], p["g2"], p["be2"], stride=(1, 1),
                         residual=res, apply_act=True)


def residual_layer_forward(params_list, x):
    x = x.astype(jnp.bfloat16)     # bf16 activations in HBM between kernels
    for p in params_list:
        x = block_forward(p, x)
    return x


# ---------------------------------------------------------------------------
# Pure-JAX f32 reference (NCHW) for correctness check
# ---------------------------------------------------------------------------
def _conv_ref(x, w4, b, stride):
    kh, kw = w4.shape[:2]
    out = jax.lax.conv_general_dilated(
        x, w4, window_strides=stride,
        padding=(((kh - 1) // 2,) * 2, ((kw - 1) // 2,) * 2),
        dimension_numbers=("NCHW", "HWIO", "NCHW"),
        precision=jax.lax.Precision.HIGHEST)
    if b is not None:
        out = out + b.reshape(1, -1, 1, 1)
    return out


def _in_ref(x, gamma, beta):
    mean = jnp.mean(x, axis=(2, 3), keepdims=True)
    var = jnp.mean((x - mean) ** 2, axis=(2, 3), keepdims=True)
    y = (x - mean) * jax.lax.rsqrt(var + EPS)
    return y * gamma.reshape(1, -1, 1, 1) + beta.reshape(1, -1, 1, 1)


def _lrelu(x):
    return jnp.where(x >= 0, x, NEG_SLOPE * x)


def block_ref(p, x):
    stride = tuple(p["stride"]) if p["stride"] is not None else (1, 1)
    h = _lrelu(_in_ref(_conv_ref(x, p["w1"], p["b1"], stride), p["g1"], p["be1"]))
    if p["needs_ds"]:
        res = _in_ref(_conv_ref(x, p["wd"], None, stride), p["gd"], p["bed"])
    else:
        res = x
    out = _in_ref(_conv_ref(h, p["w2"], p["b2"], (1, 1)), p["g2"], p["be2"]) + res
    return _lrelu(out)


def residual_layer_ref(params_list, x):
    for p in params_list:
        x = block_ref(p, x)
    return x


# ---------------------------------------------------------------------------
if __name__ == "__main__":
    key = jax.random.PRNGKey(0)
    kx, kb1, kb2 = jax.random.split(key, 3)

    # ResidualLayer(input_channels=4, output_channels=8, kernel_size=(3,3),
    #               num_blocks=2, first_stride=(2,2))
    N, Cin, Cout, H, W = 2, 4, 8, 16, 16
    params = [
        init_block(kb1, Cin, Cout, (3, 3), stride=(2, 2)),   # block 1 (downsamples)
        init_block(kb2, Cout, Cout, (3, 3), stride=None),    # block 2 (identity skip)
    ]

    x = jax.random.normal(kx, (N, Cin, H, W), jnp.float32)   # PyTorch NCHW

    fwd = jax.jit(functools.partial(residual_layer_forward, params))
    out = fwd(x)
    jax.block_until_ready(out)

    # f32 reference on the same bf16-quantized input.  The reference adds the
    # conv bias; the kernel omits it (InstanceNorm cancels it exactly).
    x_q = x.astype(jnp.bfloat16).astype(jnp.float32)
    ref = residual_layer_ref(params, x_q)

    np.testing.assert_allclose(np.asarray(out.astype(jnp.float32)),
                               np.asarray(ref), atol=3e-2, rtol=3e-2)
    assert out.shape == (N, Cout, H // 2, W // 2)
    print("KERNEL_OK")
</pallas_src>

<mosaic_0001>
module attributes {stable_mosaic.version = 11 : i64} {
  func.func @_fused_conv_in_kernel(%arg0: i32, %arg1: memref<1x16x128xbf16, #tpu.memory_space<vmem>>, %arg2: memref<8x16xbf16, #tpu.memory_space<vmem>>, %arg3: memref<8x2xf32, #tpu.memory_space<vmem>>, %arg4: memref<1x128xf32, #tpu.memory_space<vmem>>, %arg5: memref<1x8x128xbf16, #tpu.memory_space<vmem>>) attributes {dimension_semantics = [#tpu.dimension_semantics<parallel>], iteration_bounds = array<i64: 2>, scalar_prefetch = 0 : i64, scratch_operands = 0 : i64, tpu.core_type = #tpu.core_type<tc>, window_params = [{transform_indices = @transform_0, window_bounds = array<i64: 1, 16, 128>}, {pipeline_mode = #tpu.pipeline_mode<synchronous>, transform_indices = @transform_1, window_bounds = array<i64: 8, 16>}, {pipeline_mode = #tpu.pipeline_mode<synchronous>, transform_indices = @transform_2, window_bounds = array<i64: 8, 2>}, {pipeline_mode = #tpu.pipeline_mode<synchronous>, transform_indices = @transform_3, window_bounds = array<i64: 1, 128>}, {transform_indices = @transform_4, window_bounds = array<i64: 1, 8, 128>}]} {
    %c0 = arith.constant 0 : index
    %c0_0 = arith.constant 0 : index
    %c0_1 = arith.constant 0 : index
    %0 = vector.load %arg1[%c0, %c0_0, %c0_1] : memref<1x16x128xbf16, #tpu.memory_space<vmem>>, vector<1x16x128xbf16>
    %1 = vector.shape_cast %0 : vector<1x16x128xbf16> to vector<16x128xbf16>
    %c0_2 = arith.constant 0 : index
    %c0_3 = arith.constant 0 : index
    %2 = vector.load %arg2[%c0_2, %c0_3] : memref<8x16xbf16, #tpu.memory_space<vmem>>, vector<8x16xbf16>
    %cst = arith.constant dense<0.000000e+00> : vector<8x128xf32>
    %3 = tpu.matmul %2, %1, %cst {dimension_numbers = #tpu.dot_dimension_numbers<[1], [0], [0], [1], [0, 0, 1, 1], [], []>} : vector<8x16xbf16>, vector<16x128xbf16>, vector<8x128xf32> -> vector<8x128xf32>
    %c0_4 = arith.constant 0 : index
    %c0_5 = arith.constant 0 : index
    %4 = vector.load %arg4[%c0_4, %c0_5] : memref<1x128xf32, #tpu.memory_space<vmem>>, vector<1x128xf32>
    %5 = vector.broadcast %4 : vector<1x128xf32> to vector<8x128xf32>
    %6 = arith.mulf %3, %5 : vector<8x128xf32>
    %cst_6 = arith.constant dense<0.000000e+00> : vector<8xf32>
    %7 = vector.multi_reduction <add>, %6, %cst_6 [1] : vector<8x128xf32> to vector<8xf32>
    %8 = vector.shape_cast %7 : vector<8xf32> to vector<8x1xf32>
    %9 = arith.mulf %6, %3 : vector<8x128xf32>
    %cst_7 = arith.constant dense<0.000000e+00> : vector<8xf32>
    %10 = vector.multi_reduction <add>, %9, %cst_7 [1] : vector<8x128xf32> to vector<8xf32>
    %11 = vector.shape_cast %10 : vector<8xf32> to vector<8x1xf32>
    %cst_8 = arith.constant 1.562500e-02 : f32
    %12 = vector.broadcast %cst_8 : f32 to vector<8x1xf32>
    %13 = arith.mulf %8, %12 : vector<8x1xf32>
    %cst_9 = arith.constant 1.562500e-02 : f32
    %14 = vector.broadcast %cst_9 : f32 to vector<8x1xf32>
    %15 = arith.mulf %11, %14 : vector<8x1xf32>
    %16 = arith.mulf %13, %13 : vector<8x1xf32>
    %17 = arith.subf %15, %16 : vector<8x1xf32>
    %c0_10 = arith.constant 0 : index
    %c0_11 = arith.constant 0 : index
    %18 = vector.load %arg3[%c0_10, %c0_11] : memref<8x2xf32, #tpu.memory_space<vmem>>, vector<8x1xf32>
    %cst_12 = arith.constant 9.99999974E-6 : f32
    %19 = vector.broadcast %cst_12 : f32 to vector<8x1xf32>
    %20 = arith.addf %17, %19 : vector<8x1xf32>
    %21 = math.rsqrt %20 : vector<8x1xf32>
    %22 = arith.mulf %18, %21 : vector<8x1xf32>
    %c0_13 = arith.constant 0 : index
    %c1 = arith.constant 1 : index
    %23 = vector.load %arg3[%c0_13, %c1] : memref<8x2xf32, #tpu.memory_space<vmem>>, vector<8x1xf32>
    %24 = arith.mulf %13, %22 : vector<8x1xf32>
    %25 = arith.subf %23, %24 : vector<8x1xf32>
    %26 = vector.broadcast %22 : vector<8x1xf32> to vector<8x128xf32>
    %27 = arith.mulf %3, %26 : vector<8x128xf32>
    %28 = vector.broadcast %25 : vector<8x1xf32> to vector<8x128xf32>
    %29 = arith.addf %27, %28 : vector<8x128xf32>
    %30 = arith.truncf %29 : vector<8x128xf32> to vector<8x128xbf16>
    %c0_14 = arith.constant 0 : index
    %c0_15 = arith.constant 0 : index
    %c0_16 = arith.constant 0 : index
    %31 = vector.load %arg5[%c0_14, %c0_15, %c0_16] : memref<1x8x128xbf16, #tpu.memory_space<vmem>>, vector<1x8x128xbf16>
    %32 = vector.shape_cast %31 : vector<1x8x128xbf16> to vector<8x128xbf16>
    %33 = vector.shape_cast %30 : vector<8x128xbf16> to vector<1x8x128xbf16>
    tpu.vector_store %arg5[%c0_14, %c0_15, %c0_16], %33 {strides = array<i32>} : memref<1x8x128xbf16, #tpu.memory_space<vmem>>, vector<1x8x128xbf16>,
    return
  }
  func.func @transform_0(%arg0: i32) -> (i32, i32, i32) {
    %c0_i32 = arith.constant 0 : i32
    %c0_i32_0 = arith.constant 0 : i32
    %c0_i32_1 = arith.constant 0 : i32
    return %arg0, %c0_i32, %c0_i32_0 : i32, i32, i32
  }
  func.func @transform_1(%arg0: i32) -> (i32, i32) {
    %c0_i32 = arith.constant 0 : i32
    %c0_i32_0 = arith.constant 0 : i32
    %c0_i32_1 = arith.constant 0 : i32
    return %c0_i32, %c0_i32_0 : i32, i32
  }
  func.func @transform_2(%arg0: i32) -> (i32, i32) {
    %c0_i32 = arith.constant 0 : i32
    %c0_i32_0 = arith.constant 0 : i32
    %c0_i32_1 = arith.constant 0 : i32
    return %c0_i32, %c0_i32_0 : i32, i32
  }
  func.func @transform_3(%arg0: i32) -> (i32, i32) {
    %c0_i32 = arith.constant 0 : i32
    %c0_i32_0 = arith.constant 0 : i32
    %c0_i32_1 = arith.constant 0 : i32
    return %c0_i32, %c0_i32_0 : i32, i32
  }
  func.func @transform_4(%arg0: i32) -> (i32, i32, i32) {
    %c0_i32 = arith.constant 0 : i32
    %c0_i32_0 = arith.constant 0 : i32
    %c0_i32_1 = arith.constant 0 : i32
    return %arg0, %c0_i32, %c0_i32_0 : i32, i32, i32
  }
}

module attributes {stable_mosaic.version = 11 : i64} {
  func.func @_fused_conv_in_kernel(%arg0: i32, %arg1: memref<1x16x256xbf16, #tpu.memory_space<vmem>>, %arg2: memref<8x64xbf16, #tpu.memory_space<vmem>>, %arg3: memref<8x2xf32, #tpu.memory_space<vmem>>, %arg4: memref<1x128xf32, #tpu.memory_space<vmem>>, %arg5: memref<1x8x128xbf16, #tpu.memory_space<vmem>>) attributes {dimension_semantics = [#tpu.dimension_semantics<parallel>], iteration_bounds = array<i64: 2>, scalar_prefetch = 0 : i64, scratch_operands = 0 : i64, tpu.core_type = #tpu.core_type<tc>, window_params = [{transform_indices = @transform_0, window_bounds = array<i64: 1, 16, 256>}, {pipeline_mode = #tpu.pipeline_mode<synchronous>, transform_indices = @transform_1, window_bounds = array<i64: 8, 64>}, {pipeline_mode = #tpu.pipeline_mode<synchronous>, transform_indices = @transform_2, window_bounds = array<i64: 8, 2>}, {pipeline_mode = #tpu.pipeline_mode<synchronous>, transform_indices = @transform_3, window_bounds = array<i64: 1, 128>}, {transform_indices = @transform_4, window_bounds = array<i64: 1, 8, 128>}]} {
    %c0 = arith.constant 0 : index
    %c0_0 = arith.constant 0 : index
    %c0_1 = arith.constant 0 : index
    %0 = vector.load %arg1[%c0, %c0_0, %c0_1] : memref<1x16x256xbf16, #tpu.memory_space<vmem>>, vector<1x16x256xbf16>
    %1 = vector.shape_cast %0 : vector<1x16x256xbf16> to vector<16x256xbf16>
    %2 = vector.extract_strided_slice %1 {offsets = [0, 0], sizes = [16, 128], strides = [1, 1]} : vector<16x256xbf16> to vector<16x128xbf16>
    %3 = vector.extract_strided_slice %1 {offsets = [0, 1], sizes = [16, 128], strides = [1, 1]} : vector<16x256xbf16> to vector<16x128xbf16>
    %4 = vector.extract_strided_slice %1 {offsets = [0, 9], sizes = [16, 128], strides = [1, 1]} : vector<16x256xbf16> to vector<16x128xbf16>
    %5 = vector.extract_strided_slice %1 {offsets = [0, 10], sizes = [16, 128], strides = [1, 1]} : vector<16x256xbf16> to vector<16x128xbf16>
    %6 = arith.extf %2 : vector<16x128xbf16> to vector<16x128xf32>
    %7 = arith.extf %3 : vector<16x128xbf16> to vector<16x128xf32>
    %8 = arith.extf %4 : vector<16x128xbf16> to vector<16x128xf32>
    %9 = arith.extf %5 : vector<16x128xbf16> to vector<16x128xf32>
    %10 = tpu.concatenate %6, %7, %8, %9 in 0 : vector<16x128xf32>, vector<16x128xf32>, vector<16x128xf32>, vector<16x128xf32> -> vector<64x128xf32>
    %11 = arith.truncf %10 : vector<64x128xf32> to vector<64x128xbf16>
    %c0_2 = arith.constant 0 : index
    %c0_3 = arith.constant 0 : index
    %12 = vector.load %arg2[%c0_2, %c0_3] : memref<8x64xbf16, #tpu.memory_space<vmem>>, vector<8x64xbf16>
    %cst = arith.constant dense<0.000000e+00> : vector<8x128xf32>
    %13 = tpu.matmul %12, %11, %cst {dimension_numbers = #tpu.dot_dimension_numbers<[1], [0], [0], [1], [0, 0, 1, 1], [], []>} : vector<8x64xbf16>, vector<64x128xbf16>, vector<8x128xf32> -> vector<8x128xf32>
    %c0_4 = arith.constant 0 : index
    %c0_5 = arith.constant 0 : index
    %14 = vector.load %arg4[%c0_4, %c0_5] : memref<1x128xf32, #tpu.memory_space<vmem>>, vector<1x128xf32>
    %15 = vector.broadcast %14 : vector<1x128xf32> to vector<8x128xf32>
    %16 = arith.mulf %13, %15 : vector<8x128xf32>
    %cst_6 = arith.constant dense<0.000000e+00> : vector<8xf32>
    %17 = vector.multi_reduction <add>, %16, %cst_6 [1] : vector<8x128xf32> to vector<8xf32>
    %18 = vector.shape_cast %17 : vector<8xf32> to vector<8x1xf32>
    %19 = arith.mulf %16, %13 : vector<8x128xf32>
    %cst_7 = arith.constant dense<0.000000e+00> : vector<8xf32>
    %20 = vector.multi_reduction <add>, %19, %cst_7 [1] : vector<8x128xf32> to vector<8xf32>
    %21 = vector.shape_cast %20 : vector<8xf32> to vector<8x1xf32>
    %cst_8 = arith.constant 1.562500e-02 : f32
    %22 = vector.broadcast %cst_8 : f32 to vector<8x1xf32>
    %23 = arith.mulf %18, %22 : vector<8x1xf32>
    %cst_9 = arith.constant 1.562500e-02 : f32
    %24 = vector.broadcast %cst_9 : f32 to vector<8x1xf32>
    %25 = arith.mulf %21, %24 : vector<8x1xf32>
    %26 = arith.mulf %23, %23 : vector<8x1xf32>
    %27 = arith.subf %25, %26 : vector<8x1xf32>
    %c0_10 = arith.constant 0 : index
    %c0_11 = arith.constant 0 : index
    %28 = vector.load %arg3[%c0_10, %c0_11] : memref<8x2xf32, #tpu.memory_space<vmem>>, vector<8x1xf32>
    %cst_12 = arith.constant 9.99999974E-6 : f32
    %29 = vector.broadcast %cst_12 : f32 to vector<8x1xf32>
    %30 = arith.addf %27, %29 : vector<8x1xf32>
    %31 = math.rsqrt %30 : vector<8x1xf32>
    %32 = arith.mulf %28, %31 : vector<8x1xf32>
    %c0_13 = arith.constant 0 : index
    %c1 = arith.constant 1 : index
    %33 = vector.load %arg3[%c0_13, %c1] : memref<8x2xf32, #tpu.memory_space<vmem>>, vector<8x1xf32>
    %34 = arith.mulf %23, %32 : vector<8x1xf32>
    %35 = arith.subf %33, %34 : vector<8x1xf32>
    %36 = vector.broadcast %32 : vector<8x1xf32> to vector<8x128xf32>
    %37 = arith.mulf %13, %36 : vector<8x128xf32>
    %38 = vector.broadcast %35 : vector<8x1xf32> to vector<8x128xf32>
    %39 = arith.addf %37, %38 : vector<8x128xf32>
    %cst_14 = arith.constant 0.000000e+00 : f32
    %40 = vector.broadcast %cst_14 : f32 to vector<8x128xf32>
    %41 = arith.cmpf oge, %39, %40 : vector<8x128xf32>
    %cst_15 = arith.constant 0.00999999977 : f32
    %42 = vector.broadcast %cst_15 : f32 to vector<8x128xf32>
    %43 = arith.mulf %42, %39 : vector<8x128xf32>
    %44 = arith.select %41, %39, %43 : vector<8x128xi1>, vector<8x128xf32>
    %45 = arith.truncf %44 : vector<8x128xf32> to vector<8x128xbf16>
    %c0_16 = arith.constant 0 : index
    %c0_17 = arith.constant 0 : index
    %c0_18 = arith.constant 0 : index
    %46 = vector.load %arg5[%c0_16, %c0_17, %c0_18] : memref<1x8x128xbf16, #tpu.memory_space<vmem>>, vector<1x8x128xbf16>
    %47 = vector.shape_cast %46 : vector<1x8x128xbf16> to vector<8x128xbf16>
    %48 = vector.shape_cast %45 : vector<8x128xbf16> to vector<1x8x128xbf16>
    tpu.vector_store %arg5[%c0_16, %c0_17, %c0_18], %48 {strides = array<i32>} : memref<1x8x128xbf16, #tpu.memory_space<vmem>>, vector<1x8x128xbf16>,
    return
  }
  func.func @transform_0(%arg0: i32) -> (i32, i32, i32) {
    %c0_i32 = arith.constant 0 : i32
    %c0_i32_0 = arith.constant 0 : i32
    %c0_i32_1 = arith.constant 0 : i32
    return %arg0, %c0_i32, %c0_i32_0 : i32, i32, i32
  }
  func.func @transform_1(%arg0: i32) -> (i32, i32) {
    %c0_i32 = arith.constant 0 : i32
    %c0_i32_0 = arith.constant 0 : i32
    %c0_i32_1 = arith.constant 0 : i32
    return %c0_i32, %c0_i32_0 : i32, i32
  }
  func.func @transform_2(%arg0: i32) -> (i32, i32) {
    %c0_i32 = arith.constant 0 : i32
    %c0_i32_0 = arith.constant 0 : i32
    %c0_i32_1 = arith.constant 0 : i32
    return %c0_i32, %c0_i32_0 : i32, i32
  }
  func.func @transform_3(%arg0: i32) -> (i32, i32) {
    %c0_i32 = arith.constant 0 : i32
    %c0_i32_0 = arith.constant 0 : i32
    %c0_i32_1 = arith.constant 0 : i32
    return %c0_i32, %c0_i32_0 : i32, i32
  }
  func.func @transform_4(%arg0: i32) -> (i32, i32, i32) {
    %c0_i32 = arith.constant 0 : i32
    %c0_i32_0 = arith.constant 0 : i32
    %c0_i32_1 = arith.constant 0 : i32
    return %arg0, %c0_i32, %c0_i32_0 : i32, i32, i32
  }
}

module attributes {stable_mosaic.version = 11 : i64} {
  func.func @_fused_conv_in_kernel(%arg0: i32, %arg1: memref<1x8x256xbf16, #tpu.memory_space<vmem>>, %arg2: memref<8x72xbf16, #tpu.memory_space<vmem>>, %arg3: memref<8x2xf32, #tpu.memory_space<vmem>>, %arg4: memref<1x128xf32, #tpu.memory_space<vmem>>, %arg5: memref<1x8x128xbf16, #tpu.memory_space<vmem>>, %arg6: memref<1x8x128xbf16, #tpu.memory_space<vmem>>) attributes {dimension_semantics = [#tpu.dimension_semantics<parallel>], iteration_bounds = array<i64: 2>, scalar_prefetch = 0 : i64, scratch_operands = 0 : i64, tpu.core_type = #tpu.core_type<tc>, window_params = [{transform_indices = @transform_0, window_bounds = array<i64: 1, 8, 256>}, {pipeline_mode = #tpu.pipeline_mode<synchronous>, transform_indices = @transform_1, window_bounds = array<i64: 8, 72>}, {pipeline_mode = #tpu.pipeline_mode<synchronous>, transform_indices = @transform_2, window_bounds = array<i64: 8, 2>}, {pipeline_mode = #tpu.pipeline_mode<synchronous>, transform_indices = @transform_3, window_bounds = array<i64: 1, 128>}, {transform_indices = @transform_4, window_bounds = array<i64: 1, 8, 128>}, {transform_indices = @transform_5, window_bounds = array<i64: 1, 8, 128>}]} {
    %c0 = arith.constant 0 : index
    %c0_0 = arith.constant 0 : index
    %c0_1 = arith.constant 0 : index
    %0 = vector.load %arg1[%c0, %c0_0, %c0_1] : memref<1x8x256xbf16, #tpu.memory_space<vmem>>, vector<1x8x256xbf16>
    %1 = vector.shape_cast %0 : vector<1x8x256xbf16> to vector<8x256xbf16>
    %2 = vector.extract_strided_slice %1 {offsets = [0, 0], sizes = [8, 128], strides = [1, 1]} : vector<8x256xbf16> to vector<8x128xbf16>
    %3 = vector.extract_strided_slice %1 {offsets = [0, 1], sizes = [8, 128], strides = [1, 1]} : vector<8x256xbf16> to vector<8x128xbf16>
    %4 = vector.extract_strided_slice %1 {offsets = [0, 2], sizes = [8, 128], strides = [1, 1]} : vector<8x256xbf16> to vector<8x128xbf16>
    %5 = vector.extract_strided_slice %1 {offsets = [0, 10], sizes = [8, 128], strides = [1, 1]} : vector<8x256xbf16> to vector<8x128xbf16>
    %6 = vector.extract_strided_slice %1 {offsets = [0, 11], sizes = [8, 128], strides = [1, 1]} : vector<8x256xbf16> to vector<8x128xbf16>
    %7 = vector.extract_strided_slice %1 {offsets = [0, 12], sizes = [8, 128], strides = [1, 1]} : vector<8x256xbf16> to vector<8x128xbf16>
    %8 = vector.extract_strided_slice %1 {offsets = [0, 20], sizes = [8, 128], strides = [1, 1]} : vector<8x256xbf16> to vector<8x128xbf16>
    %9 = vector.extract_strided_slice %1 {offsets = [0, 21], sizes = [8, 128], strides = [1, 1]} : vector<8x256xbf16> to vector<8x128xbf16>
    %10 = vector.extract_strided_slice %1 {offsets = [0, 22], sizes = [8, 128], strides = [1, 1]} : vector<8x256xbf16> to vector<8x128xbf16>
    %11 = arith.extf %2 : vector<8x128xbf16> to vector<8x128xf32>
    %12 = arith.extf %3 : vector<8x128xbf16> to vector<8x128xf32>
    %13 = arith.extf %4 : vector<8x128xbf16> to vector<8x128xf32>
    %14 = arith.extf %5 : vector<8x128xbf16> to vector<8x128xf32>
    %15 = arith.extf %6 : vector<8x128xbf16> to vector<8x128xf32>
    %16 = arith.extf %7 : vector<8x128xbf16> to vector<8x128xf32>
    %17 = arith.extf %8 : vector<8x128xbf16> to vector<8x128xf32>
    %18 = arith.extf %9 : vector<8x128xbf16> to vector<8x128xf32>
    %19 = arith.extf %10 : vector<8x128xbf16> to vector<8x128xf32>
    %20 = tpu.concatenate %11, %12, %13, %14, %15, %16, %17, %18, %19 in 0 : vector<8x128xf32>, vector<8x128xf32>, vector<8x128xf32>, vector<8x128xf32>, vector<8x128xf32>, vector<8x128xf32>, vector<8x128xf32>, vector<8x128xf32>, vector<8x128xf32> -> vector<72x128xf32>
    %21 = arith.truncf %20 : vector<72x128xf32> to vector<72x128xbf16>
    %c0_2 = arith.constant 0 : index
    %c0_3 = arith.constant 0 : index
    %22 = vector.load %arg2[%c0_2, %c0_3] : memref<8x72xbf16, #tpu.memory_space<vmem>>, vector<8x72xbf16>
    %cst = arith.constant dense<0.000000e+00> : vector<8x128xf32>
    %23 = tpu.matmul %22, %21, %cst {dimension_numbers = #tpu.dot_dimension_numbers<[1], [0], [0], [1], [0, 0, 1, 1], [], []>} : vector<8x72xbf16>, vector<72x128xbf16>, vector<8x128xf32> -> vector<8x128xf32>
    %c0_4 = arith.constant 0 : index
    %c0_5 = arith.constant 0 : index
    %24 = vector.load %arg4[%c0_4, %c0_5] : memref<1x128xf32, #tpu.memory_space<vmem>>, vector<1x128xf32>
    %25 = vector.broadcast %24 : vector<1x128xf32> to vector<8x128xf32>
    %26 = arith.mulf %23, %25 : vector<8x128xf32>
    %cst_6 = arith.constant dense<0.000000e+00> : vector<8xf32>
    %27 = vector.multi_reduction <add>, %26, %cst_6 [1] : vector<8x128xf32> to vector<8xf32>
    %28 = vector.shape_cast %27 : vector<8xf32> to vector<8x1xf32>
    %29 = arith.mulf %26, %23 : vector<8x128xf32>
    %cst_7 = arith.constant dense<0.000000e+00> : vector<8xf32>
    %30 = vector.multi_reduction <add>, %29, %cst_7 [1] : vector<8x128xf32> to vector<8xf32>
    %31 = vector.shape_cast %30 : vector<8xf32> to vector<8x1xf32>
    %cst_8 = arith.constant 1.562500e-02 : f32
    %32 = vector.broadcast %cst_8 : f32 to vector<8x1xf32>
    %33 = arith.mulf %28, %32 : vector<8x1xf32>
    %cst_9 = arith.constant 1.562500e-02 : f32
    %34 = vector.broadcast %cst_9 : f32 to vector<8x1xf32>
    %35 = arith.mulf %31, %34 : vector<8x1xf32>
    %36 = arith.mulf %33, %33 : vector<8x1xf32>
    %37 = arith.subf %35, %36 : vector<8x1xf32>
    %c0_10 = arith.constant 0 : index
    %c0_11 = arith.constant 0 : index
    %38 = vector.load %arg3[%c0_10, %c0_11] : memref<8x2xf32, #tpu.memory_space<vmem>>, vector<8x1xf32>
    %cst_12 = arith.constant 9.99999974E-6 : f32
    %39 = vector.broadcast %cst_12 : f32 to vector<8x1xf32>
    %40 = arith.addf %37, %39 : vector<8x1xf32>
    %41 = math.rsqrt %40 : vector<8x1xf32>
    %42 = arith.mulf %38, %41 : vector<8x1xf32>
    %c0_13 = arith.constant 0 : index
    %c1 = arith.constant 1 : index
    %43 = vector.load %arg3[%c0_13, %c1] : memref<8x2xf32, #tpu.memory_space<vmem>>, vector<8x1xf32>
    %44 = arith.mulf %33, %42 : vector<8x1xf32>
    %45 = arith.subf %43, %44 : vector<8x1xf32>
    %46 = vector.broadcast %42 : vector<8x1xf32> to vector<8x128xf32>
    %47 = arith.mulf %23, %46 : vector<8x128xf32>
    %48 = vector.broadcast %45 : vector<8x1xf32> to vector<8x128xf32>
    %49 = arith.addf %47, %48 : vector<8x128xf32>
    %c0_14 = arith.constant 0 : index
    %c0_15 = arith.constant 0 : index
    %c0_16 = arith.constant 0 : index
    %50 = vector.load %arg5[%c0_14, %c0_15, %c0_16] : memref<1x8x128xbf16, #tpu.memory_space<vmem>>, vector<1x8x128xbf16>
    %51 = vector.shape_cast %50 : vector<1x8x128xbf16> to vector<8x128xbf16>
    %52 = arith.extf %51 : vector<8x128xbf16> to vector<8x128xf32>
    %53 = arith.addf %49, %52 : vector<8x128xf32>
    %cst_17 = arith.constant 0.000000e+00 : f32
    %54 = vector.broadcast %cst_17 : f32 to vector<8x128xf32>
    %55 = arith.cmpf oge, %53, %54 : vector<8x128xf32>
    %cst_18 = arith.constant 0.00999999977 : f32
    %56 = vector.broadcast %cst_18 : f32 to vector<8x128xf32>
    %57 = arith.mulf %56, %53 : vector<8x128xf32>
    %58 = arith.select %55, %53, %57 : vector<8x128xi1>, vector<8x128xf32>
    %59 = arith.truncf %58 : vector<8x128xf32> to vector<8x128xbf16>
    %c0_19 = arith.constant 0 : index
    %c0_20 = arith.constant 0 : index
    %c0_21 = arith.constant 0 : index
    %60 = vector.load %arg6[%c0_19, %c0_20, %c0_21] : memref<1x8x128xbf16, #tpu.memory_space<vmem>>, vector<1x8x128xbf16>
    %61 = vector.shape_cast %60 : vector<1x8x128xbf16> to vector<8x128xbf16>
    %62 = vector.shape_cast %59 : vector<8x128xbf16> to vector<1x8x128xbf16>
    tpu.vector_store %arg6[%c0_19, %c0_20, %c0_21], %62 {strides = array<i32>} : memref<1x8x128xbf16, #tpu.memory_space<vmem>>, vector<1x8x128xbf16>,
    return
  }
  func.func @transform_0(%arg0: i32) -> (i32, i32, i32) {
    %c0_i32 = arith.constant 0 : i32
    %c0_i32_0 = arith.constant 0 : i32
    %c0_i32_1 = arith.constant 0 : i32
    return %arg0, %c0_i32, %c0_i32_0 : i32, i32, i32
  }
  func.func @transform_1(%arg0: i32) -> (i32, i32) {
    %c0_i32 = arith.constant 0 : i32
    %c0_i32_0 = arith.constant 0 : i32
    %c0_i32_1 = arith.constant 0 : i32
    return %c0_i32, %c0_i32_0 : i32, i32
  }
  func.func @transform_2(%arg0: i32) -> (i32, i32) {
    %c0_i32 = arith.constant 0 : i32
    %c0_i32_0 = arith.constant 0 : i32
    %c0_i32_1 = arith.constant 0 : i32
    return %c0_i32, %c0_i32_0 : i32, i32
  }
  func.func @transform_3(%arg0: i32) -> (i32, i32) {
    %c0_i32 = arith.constant 0 : i32
    %c0_i32_0 = arith.constant 0 : i32
    %c0_i32_1 = arith.constant 0 : i32
    return %c0_i32, %c0_i32_0 : i32, i32
  }
  func.func @transform_4(%arg0: i32) -> (i32, i32, i32) {
    %c0_i32 = arith.constant 0 : i32
    %c0_i32_0 = arith.constant 0 : i32
    %c0_i32_1 = arith.constant 0 : i32
    return %arg0, %c0_i32, %c0_i32_0 : i32, i32, i32
  }
  func.func @transform_5(%arg0: i32) -> (i32, i32, i32) {
    %c0_i32 = arith.constant 0 : i32
    %c0_i32_0 = arith.constant 0 : i32
    %c0_i32_1 = arith.constant 0 : i32
    return %arg0, %c0_i32, %c0_i32_0 : i32, i32, i32
  }
}

module attributes {stable_mosaic.version = 11 : i64} {
  func.func @_fused_conv_in_kernel(%arg0: i32, %arg1: memref<1x8x256xbf16, #tpu.memory_space<vmem>>, %arg2: memref<8x72xbf16, #tpu.memory_space<vmem>>, %arg3: memref<8x2xf32, #tpu.memory_space<vmem>>, %arg4: memref<1x128xf32, #tpu.memory_space<vmem>>, %arg5: memref<1x8x128xbf16, #tpu.memory_space<vmem>>) attributes {dimension_semantics = [#tpu.dimension_semantics<parallel>], iteration_bounds = array<i64: 2>, scalar_prefetch = 0 : i64, scratch_operands = 0 : i64, tpu.core_type = #tpu.core_type<tc>, window_params = [{transform_indices = @transform_0, window_bounds = array<i64: 1, 8, 256>}, {pipeline_mode = #tpu.pipeline_mode<synchronous>, transform_indices = @transform_1, window_bounds = array<i64: 8, 72>}, {pipeline_mode = #tpu.pipeline_mode<synchronous>, transform_indices = @transform_2, window_bounds = array<i64: 8, 2>}, {pipeline_mode = #tpu.pipeline_mode<synchronous>, transform_indices = @transform_3, window_bounds = array<i64: 1, 128>}, {transform_indices = @transform_4, window_bounds = array<i64: 1, 8, 128>}]} {
    %c0 = arith.constant 0 : index
    %c0_0 = arith.constant 0 : index
    %c0_1 = arith.constant 0 : index
    %0 = vector.load %arg1[%c0, %c0_0, %c0_1] : memref<1x8x256xbf16, #tpu.memory_space<vmem>>, vector<1x8x256xbf16>
    %1 = vector.shape_cast %0 : vector<1x8x256xbf16> to vector<8x256xbf16>
    %2 = vector.extract_strided_slice %1 {offsets = [0, 0], sizes = [8, 128], strides = [1, 1]} : vector<8x256xbf16> to vector<8x128xbf16>
    %3 = vector.extract_strided_slice %1 {offsets = [0, 1], sizes = [8, 128], strides = [1, 1]} : vector<8x256xbf16> to vector<8x128xbf16>
    %4 = vector.extract_strided_slice %1 {offsets = [0, 2], sizes = [8, 128], strides = [1, 1]} : vector<8x256xbf16> to vector<8x128xbf16>
    %5 = vector.extract_strided_slice %1 {offsets = [0, 10], sizes = [8, 128], strides = [1, 1]} : vector<8x256xbf16> to vector<8x128xbf16>
    %6 = vector.extract_strided_slice %1 {offsets = [0, 11], sizes = [8, 128], strides = [1, 1]} : vector<8x256xbf16> to vector<8x128xbf16>
    %7 = vector.extract_strided_slice %1 {offsets = [0, 12], sizes = [8, 128], strides = [1, 1]} : vector<8x256xbf16> to vector<8x128xbf16>
    %8 = vector.extract_strided_slice %1 {offsets = [0, 20], sizes = [8, 128], strides = [1, 1]} : vector<8x256xbf16> to vector<8x128xbf16>
    %9 = vector.extract_strided_slice %1 {offsets = [0, 21], sizes = [8, 128], strides = [1, 1]} : vector<8x256xbf16> to vector<8x128xbf16>
    %10 = vector.extract_strided_slice %1 {offsets = [0, 22], sizes = [8, 128], strides = [1, 1]} : vector<8x256xbf16> to vector<8x128xbf16>
    %11 = arith.extf %2 : vector<8x128xbf16> to vector<8x128xf32>
    %12 = arith.extf %3 : vector<8x128xbf16> to vector<8x128xf32>
    %13 = arith.extf %4 : vector<8x128xbf16> to vector<8x128xf32>
    %14 = arith.extf %5 : vector<8x128xbf16> to vector<8x128xf32>
    %15 = arith.extf %6 : vector<8x128xbf16> to vector<8x128xf32>
    %16 = arith.extf %7 : vector<8x128xbf16> to vector<8x128xf32>
    %17 = arith.extf %8 : vector<8x128xbf16> to vector<8x128xf32>
    %18 = arith.extf %9 : vector<8x128xbf16> to vector<8x128xf32>
    %19 = arith.extf %10 : vector<8x128xbf16> to vector<8x128xf32>
    %20 = tpu.concatenate %11, %12, %13, %14, %15, %16, %17, %18, %19 in 0 : vector<8x128xf32>, vector<8x128xf32>, vector<8x128xf32>, vector<8x128xf32>, vector<8x128xf32>, vector<8x128xf32>, vector<8x128xf32>, vector<8x128xf32>, vector<8x128xf32> -> vector<72x128xf32>
    %21 = arith.truncf %20 : vector<72x128xf32> to vector<72x128xbf16>
    %c0_2 = arith.constant 0 : index
    %c0_3 = arith.constant 0 : index
    %22 = vector.load %arg2[%c0_2, %c0_3] : memref<8x72xbf16, #tpu.memory_space<vmem>>, vector<8x72xbf16>
    %cst = arith.constant dense<0.000000e+00> : vector<8x128xf32>
    %23 = tpu.matmul %22, %21, %cst {dimension_numbers = #tpu.dot_dimension_numbers<[1], [0], [0], [1], [0, 0, 1, 1], [], []>} : vector<8x72xbf16>, vector<72x128xbf16>, vector<8x128xf32> -> vector<8x128xf32>
    %c0_4 = arith.constant 0 : index
    %c0_5 = arith.constant 0 : index
    %24 = vector.load %arg4[%c0_4, %c0_5] : memref<1x128xf32, #tpu.memory_space<vmem>>, vector<1x128xf32>
    %25 = vector.broadcast %24 : vector<1x128xf32> to vector<8x128xf32>
    %26 = arith.mulf %23, %25 : vector<8x128xf32>
    %cst_6 = arith.constant dense<0.000000e+00> : vector<8xf32>
    %27 = vector.multi_reduction <add>, %26, %cst_6 [1] : vector<8x128xf32> to vector<8xf32>
    %28 = vector.shape_cast %27 : vector<8xf32> to vector<8x1xf32>
    %29 = arith.mulf %26, %23 : vector<8x128xf32>
    %cst_7 = arith.constant dense<0.000000e+00> : vector<8xf32>
    %30 = vector.multi_reduction <add>, %29, %cst_7 [1] : vector<8x128xf32> to vector<8xf32>
    %31 = vector.shape_cast %30 : vector<8xf32> to vector<8x1xf32>
    %cst_8 = arith.constant 1.562500e-02 : f32
    %32 = vector.broadcast %cst_8 : f32 to vector<8x1xf32>
    %33 = arith.mulf %28, %32 : vector<8x1xf32>
    %cst_9 = arith.constant 1.562500e-02 : f32
    %34 = vector.broadcast %cst_9 : f32 to vector<8x1xf32>
    %35 = arith.mulf %31, %34 : vector<8x1xf32>
    %36 = arith.mulf %33, %33 : vector<8x1xf32>
    %37 = arith.subf %35, %36 : vector<8x1xf32>
    %c0_10 = arith.constant 0 : index
    %c0_11 = arith.constant 0 : index
    %38 = vector.load %arg3[%c0_10, %c0_11] : memref<8x2xf32, #tpu.memory_space<vmem>>, vector<8x1xf32>
    %cst_12 = arith.constant 9.99999974E-6 : f32
    %39 = vector.broadcast %cst_12 : f32 to vector<8x1xf32>
    %40 = arith.addf %37, %39 : vector<8x1xf32>
    %41 = math.rsqrt %40 : vector<8x1xf32>
    %42 = arith.mulf %38, %41 : vector<8x1xf32>
    %c0_13 = arith.constant 0 : index
    %c1 = arith.constant 1 : index
    %43 = vector.load %arg3[%c0_13, %c1] : memref<8x2xf32, #tpu.memory_space<vmem>>, vector<8x1xf32>
    %44 = arith.mulf %33, %42 : vector<8x1xf32>
    %45 = arith.subf %43, %44 : vector<8x1xf32>
    %46 = vector.broadcast %42 : vector<8x1xf32> to vector<8x128xf32>
    %47 = arith.mulf %23, %46 : vector<8x128xf32>
    %48 = vector.broadcast %45 : vector<8x1xf32> to vector<8x128xf32>
    %49 = arith.addf %47, %48 : vector<8x128xf32>
    %cst_14 = arith.constant 0.000000e+00 : f32
    %50 = vector.broadcast %cst_14 : f32 to vector<8x128xf32>
    %51 = arith.cmpf oge, %49, %50 : vector<8x128xf32>
    %cst_15 = arith.constant 0.00999999977 : f32
    %52 = vector.broadcast %cst_15 : f32 to vector<8x128xf32>
    %53 = arith.mulf %52, %49 : vector<8x128xf32>
    %54 = arith.select %51, %49, %53 : vector<8x128xi1>, vector<8x128xf32>
    %55 = arith.truncf %54 : vector<8x128xf32> to vector<8x128xbf16>
    %c0_16 = arith.constant 0 : index
    %c0_17 = arith.constant 0 : index
    %c0_18 = arith.constant 0 : index
    %56 = vector.load %arg5[%c0_16, %c0_17, %c0_18] : memref<1x8x128xbf16, #tpu.memory_space<vmem>>, vector<1x8x128xbf16>
    %57 = vector.shape_cast %56 : vector<1x8x128xbf16> to vector<8x128xbf16>
    %58 = vector.shape_cast %55 : vector<8x128xbf16> to vector<1x8x128xbf16>
    tpu.vector_store %arg5[%c0_16, %c0_17, %c0_18], %58 {strides = array<i32>} : memref<1x8x128xbf16, #tpu.memory_space<vmem>>, vector<1x8x128xbf16>,
    return
  }
  func.func @transform_0(%arg0: i32) -> (i32, i32, i32) {
    %c0_i32 = arith.constant 0 : i32
    %c0_i32_0 = arith.constant 0 : i32
    %c0_i32_1 = arith.constant 0 : i32
    return %arg0, %c0_i32, %c0_i32_0 : i32, i32, i32
  }
  func.func @transform_1(%arg0: i32) -> (i32, i32) {
    %c0_i32 = arith.constant 0 : i32
    %c0_i32_0 = arith.constant 0 : i32
    %c0_i32_1 = arith.constant 0 : i32
    return %c0_i32, %c0_i32_0 : i32, i32
  }
  func.func @transform_2(%arg0: i32) -> (i32, i32) {
    %c0_i32 = arith.constant 0 : i32
    %c0_i32_0 = arith.constant 0 : i32
    %c0_i32_1 = arith.constant 0 : i32
    return %c0_i32, %c0_i32_0 : i32, i32
  }
  func.func @transform_3(%arg0: i32) -> (i32, i32) {
    %c0_i32 = arith.constant 0 : i32
    %c0_i32_0 = arith.constant 0 : i32
    %c0_i32_1 = arith.constant 0 : i32
    return %c0_i32, %c0_i32_0 : i32, i32
  }
  func.func @transform_4(%arg0: i32) -> (i32, i32, i32) {
    %c0_i32 = arith.constant 0 : i32
    %c0_i32_0 = arith.constant 0 : i32
    %c0_i32_1 = arith.constant 0 : i32
    return %arg0, %c0_i32, %c0_i32_0 : i32, i32, i32
  }
}

</mosaic_0001>

<bundles_post_ra>
// kernel: residual_layer_forward.6
= control target key start
LH: loop header
LB: loop body
LE: loop exit
PB: predicated region body
PF: predicated region fallthrough
CT: control target
= control target key end

     0   :  { %s422_s15 = smov 0   ;;  %s452_s0 = inlined_call_operand.vmem [shape: bf16[2,16,128], index: 0, kind: input, shape index: {}]   ;;  %s453_s1 = inlined_call_operand.vmem [shape: bf16[8,16], index: 1, kind: input, shape index: {}]   ;;  %s454_s2 = inlined_call_operand.vmem [shape: f32[8,2], index: 2, kind: input, shape index: {}]   ;;  %s455_s3 = inlined_call_operand.vmem [shape: f32[1,128], index: 3, kind: input, shape index: {}]   ;;  %s456_s4 = inlined_call_operand.vmem [shape: bf16[2,8,128], index: 4, kind: output, shape index: {}]  }
   0x1 LB: > { %s344_s16 = sadd.s32 4294967295, %s390_s15   ;;  %p348_p0 = scmp.ge.s32.totalorder %s390_s15, 1  ;;  %s390_s15 = sphi %s422_s15, %s14_s15  }
   0x2   : > { %p162_p1 = scmp.lt.s32.totalorder %s390_s15, 3 }
   0x4   : > { %p163_p2 = pnand %p348_p0, %p162_p1 }
   0x5   : > { %p187_p3 = scmp.lt.s32.totalorder (!%p163_p2), %s344_s16, 1  ;;  %v392_v0 = vmov (!%p163_p2), 0.0   ;;  %vm393_vm0 = vmmov (!%p163_p2), 0   ;;  %v199_v2 = vld [vmem:[%s453_s1] sm:$0xf] (!%p163_p2)  ;;  %vm206_vm1 = vcmask (!%p163_p2), 130048  }
   0x6   : > { %166 = sbr.rel (%p163_p2) target bundleno = 651 (0x28b), region = 36  ;;  %360 = vmatprep.subr.bf16.mxu0 (!%p163_p2), %v392_v0  ;;  %362 = vmatprep.mubr.msk.bf16.mxu0 (!%p163_p2), %vm393_vm0, %v392_v0  ;;  %v354_v3 = vld [vmem:[%s455_s3] ss:$0 sm:$0xff] (!%p163_p2)  ;;  %v394_v10 = vmov (!%p163_p2), 0   ;;  %v395_v18 = vmov (!%p163_p2), 1   ;;  %s396_s27 = smov (!%p163_p2), 1  }
   0x7   : > { %379 = vset.pattern.permute.xlu1 (!%p163_p2), %v394_v10  ;;  %380 = vset.pattern.permute.xlu0 (!%p163_p2), %v395_v18  ;;  %v267_v19 = vld [vmem:[%s454_s2] sm:$0xff] (!%p163_p2) }
   0xd   : > { %s458_s16 = smov (!%p187_p3, %s344_s16), 1 }
   0xe   : > { %s357_s17 = sshll.u32 %s458_s16, 3  ;;  %s351_s28 = sshll.u32 %s458_s16, 2 }
   0xf   : > { %s191_s20 = scalar_lea.vmem %s452_s0, %s357_s17  ;;  %s195_s5 = scalar_lea.vmem %s456_s4, %s351_s28 }
  0x10   : > { %v381_v1 = vld [vmem:[%s191_s20] sm:$0xff]  }
  0x11   : > { %361 = vmatpush3.bf16.msra.mxu0 %v381_v1 }
  0x14   : > { %363 = vmatmul.mubr.msk.bf16.vlgmr.msra.gmra.mrb[0].mxu0 %vm206_vm1, %v199_v2 }
  0xe7   : > { %v244_v4 = vpop.f32.mrb[0].mxu0 }
  0xe8   : > { %v364_v5 = vpop.f32.mrb[1].mxu0  ;;  %v257_v6 = vmul.f32 %v354_v3, %v244_v4 }
  0xe9   : > { %v247_v7 = vpop.f32.mrb[2].mxu0 }
  0xea   : > { %258 = vadd.xlane.f32.xlu0 %v257_v6  ;;  %v365_v8 = vpop.f32.mrb[3].mxu0  ;;  %v260_v9 = vmul.f32 %v257_v6, %v244_v4 }
  0xee   : > { %261 = vadd.xlane.f32.xlu0 %v260_v9 }
 0x177   : > { %v259_v11 = vpop.xlane.xlu0 %258 }
 0x178   : > { %v263_v12 = vmul.f32 0.015625, %v259_v11 }
 0x17a   : > { %v265_v14 = vmul.f32 %v263_v12, %v263_v12 }
 0x17b   : > { %v262_v13 = vpop.xlane.xlu0 %261 }
 0x17c   : > { %v264_v15 = vmul.f32 0.015625, %v262_v13 }
 0x17e   : > { %v266_v16 = vsub.f32 %v264_v15, %v265_v14 }
 0x180   : > { %v268_v17 = vadd.f32 1e-05, %v266_v16 }
 0x182   : > { %382 = vrsqrt.f32 %v268_v17 }
 0x18c   : > { %v383_v20 = vpop.eup %382 }
 0x18d   : > { %v270_v21 = vmul.f32 %v383_v20, %v267_v19 }
 0x18f   : > { %v271_v22 = vmul.f32 %v270_v21, %v263_v12 }
 0x191   : > { %273 = vrot.lane.b32.xlu1 %v271_v22, %s396_s27 }
 0x195   : > { %279 = vperm.xlu1 %379, %v270_v21  }
 0x203   : > { %v274_v23 = vpop.permute.xlu1 %273 }
 0x204   : > { %v276_v24 = vsub.f32 %v267_v19, %v274_v23 }
 0x206   : > { %285 = vperm.xlu0 %380, %v276_v24  }
 0x214   : > { %v280_v25 = vpop.permute.xlu1 %279 }
 0x215   : > { %v282_v26 = vmul.f32 %v280_v25, %v244_v4 }
 0x285   : > { %v286_v27 = vpop.permute.xlu0 %285 }
 0x286   : > { %v288_v28 = vadd.f32 %v286_v27, %v282_v26 }
 0x288   : > { %v289_v29 = vpack.c.bf16 %v288_v28, %v288_v28 }
 0x28a   : > { %290 = vst [vmem:[%s195_s5] sm:$0xf] %v289_v29 }
 0x28b PF: > { %s14_s15 = sadd.s32 1, %s390_s15  }
 0x28c   : > { %p11_p4 = scmp.ge.s32.totalorder %s14_s15, 4  }
 0x28e   :  { %13 = sbr.rel (!%p11_p4) target bundleno = 1 (0x1), region = 66 }

// kernel: residual_layer_forward.5
= control target key start
LH: loop header
LB: loop body
LE: loop exit
PB: predicated region body
PF: predicated region fallthrough
CT: control target
= control target key end

     0   :  { %s515_s15 = smov 0   ;;  %s545_s0 = inlined_call_operand.vmem [shape: bf16[2,16,256], index: 0, kind: input, shape index: {}]   ;;  %s546_s1 = inlined_call_operand.vmem [shape: bf16[8,64], index: 1, kind: input, shape index: {}]   ;;  %s547_s2 = inlined_call_operand.vmem [shape: f32[8,2], index: 2, kind: input, shape index: {}]   ;;  %s548_s3 = inlined_call_operand.vmem [shape: f32[1,128], index: 3, kind: input, shape index: {}]   ;;  %s549_s4 = inlined_call_operand.vmem [shape: bf16[2,8,128], index: 4, kind: output, shape index: {}]  }
   0x1 LB: > { %s392_s16 = sadd.s32 4294967295, %s480_s15   ;;  %p396_p0 = scmp.ge.s32.totalorder %s480_s15, 1  ;;  %s480_s15 = sphi %s515_s15, %s14_s15  }
   0x2   : > { %p162_p1 = scmp.lt.s32.totalorder %s480_s15, 3 }
   0x4   : > { %p163_p2 = pnand %p396_p0, %p162_p1 }
   0x5   : > { %p187_p3 = scmp.lt.s32.totalorder (!%p163_p2), %s392_s16, 1  ;;  %v482_v0 = vmov (!%p163_p2), 0.0   ;;  %s483_s21 = smov (!%p163_p2), 119   ;;  %vm485_vm0 = vmmov (!%p163_p2), 0   ;;  %vm215_vm1 = vcmask (!%p163_p2), 1039360   ;;  %vm228_vm2 = vcmask (!%p163_p2), 973824  }
   0x6   : > { %166 = sbr.rel (%p163_p2) target bundleno = 788 (0x314), region = 36  ;;  %411 = vmatprep.subr.bf16.mxu0 (!%p163_p2), %v482_v0  ;;  %s484_s22 = smov (!%p163_p2), 127   ;;  %419 = vmatprep.mubr.msk.bf16.mxu0 (!%p163_p2), %vm485_vm0, %v482_v0  ;;  %vm241_vm3 = vcmask (!%p163_p2), 965632   ;;  %v250_v37 = vld [vmem:[%s546_s1] sm:$0xf] (!%p163_p2)  ;;  %vm251_vm4 = vcmask (!%p163_p2), 523264  }
   0x7   : > { %s486_s23 = smov (!%p163_p2), 118   ;;  %v402_v38 = vld [vmem:[%s548_s3] ss:$0 sm:$0xff] (!%p163_p2)  ;;  %v487_v45 = vmov (!%p163_p2), 0   ;;  %v488_v53 = vmov (!%p163_p2), 1   ;;  %s489_s30 = smov (!%p163_p2), 1  }
   0x8   : > { %469 = vset.pattern.permute.xlu1 (!%p163_p2), %v487_v45  ;;  %470 = vset.pattern.permute.xlu0 (!%p163_p2), %v488_v53  ;;  %v312_v54 = vld [vmem:[%s547_s2] sm:$0xff] (!%p163_p2) }
   0xd   : > { %s551_s16 = smov (!%p187_p3, %s392_s16), 1 }
   0xe   : > { %s405_s17 = sshll.u32 %s551_s16, 4  ;;  %s399_s5 = sshll.u32 %s551_s16, 2 }
   0xf   : > { %s191_s20 = scalar_lea.vmem %s545_s0, %s405_s17  ;;  %s195_s8 = scalar_lea.vmem %s549_s4, %s399_s5 }
  0x10   : > { %v197_v1 = vld [vmem:[%s191_s20] sm:$0xff]  ;;  %v198_v2 = vld [vmem:[%s191_s20 + $0x8] sm:$0xff] }
  0x11   : > { %v199_v3 = vunpack.c.l.bf16 %v197_v1  ;;  %v201_v4 = vunpack.c.h.bf16 %v197_v1  ;;  %v200_v5 = vunpack.c.l.bf16 %v198_v2  ;;  %v202_v6 = vunpack.c.h.bf16 %v198_v2 }
  0x12   : > { %v400_v7 = vcombine.low %v197_v1, %v198_v2 }
  0x13   : > { %v449_v8 = vpack.i.bf16 %v201_v4, %v199_v3  ;;  %v454_v9 = vpack.i.bf16 %v202_v6, %v200_v5 }
  0x14   : > { %412 = vmatpush3.bf16.msra.mxu0 %v400_v7 }
  0x15   : > { %450 = vrot.lane.b32.xlu1 %v449_v8, %s483_s21  ;;  %440 = vrot.lane.b32.xlu0 %v449_v8, %s484_s22 }
  0x16   : > { %413 = vmatprep.subr.bf16.mxu0 %v482_v0 }
  0x19   : > { %455 = vrot.lane.b32.xlu1 %v454_v9, %s483_s21  ;;  %445 = vrot.lane.b32.xlu0 %v454_v9, %s484_s22 }
  0x1d   : > { %465 = vrot.lane.b32.xlu1 %v454_v9, %s486_s23  ;;  %460 = vrot.lane.b32.xlu0 %v449_v8, %s486_s23 }
  0x87   : > { %v451_v10 = vpop.permute.xlu1 %450  ;;  %v441_v11 = vpop.permute.xlu0 %440 }
  0x88   : > { %v443_v12 = vunpack.i.h.bf16 %v441_v11  ;;  %v442_v13 = vunpack.i.l.bf16 %v441_v11  ;;  %v453_v14 = vunpack.i.h.bf16 %v451_v10  ;;  %v452_v15 = vunpack.i.l.bf16 %v451_v10 }
  0x8a   : > { %v216_v22 = vsel %vm215_vm1, %v442_v13, %v443_v12  ;;  %v229_v27 = vsel %vm228_vm2, %v452_v15, %v453_v14 }
  0x8b   : > { %v456_v16 = vpop.permute.xlu1 %455  ;;  %v446_v17 = vpop.permute.xlu0 %445 }
  0x8c   : > { %v458_v18 = vunpack.i.h.bf16 %v456_v16  ;;  %v457_v19 = vunpack.i.l.bf16 %v456_v16  ;;  %v448_v20 = vunpack.i.h.bf16 %v446_v17  ;;  %v447_v21 = vunpack.i.l.bf16 %v446_v17 }
  0x8e   : > { %v217_v23 = vsel %vm215_vm1, %v447_v21, %v448_v20  ;;  %v230_v28 = vsel %vm228_vm2, %v457_v19, %v458_v18 }
  0x8f   : > { %v247_v24 = vpack.c.bf16 %v217_v23, %v216_v22  ;;  %v466_v25 = vpop.permute.xlu1 %465  ;;  %v461_v26 = vpop.permute.xlu0 %460  ;;  %v248_v35 = vpack.c.bf16 %v230_v28, %v229_v27 }
  0x90   : > { %v468_v29 = vunpack.i.h.bf16 %v466_v25  ;;  %v467_v30 = vunpack.i.l.bf16 %v466_v25  ;;  %v463_v31 = vunpack.i.h.bf16 %v461_v26  ;;  %v462_v32 = vunpack.i.l.bf16 %v461_v26 }
  0x91   : > { %414 = vmatpush3.bf16.msra.mxu0 %v247_v24 }
  0x92   : > { %415 = vmatprep.subr.bf16.mxu0 %v482_v0  ;;  %v242_v33 = vsel %vm241_vm3, %v462_v32, %v463_v31  ;;  %v243_v34 = vsel %vm241_vm3, %v467_v30, %v468_v29 }
  0x93   : > { %v249_v36 = vpack.c.bf16 %v243_v34, %v242_v33 }
  0x95   : > { %416 = vmatpush3.bf16.msra.mxu0 %v248_v35 }
  0x96   : > { %417 = vmatprep.subr.bf16.mxu0 %v482_v0 }
  0x99   : > { %418 = vmatpush3.bf16.msra.mxu0 %v249_v36 }
  0x9c   : > { %420 = vmatmul.mubr.msk.bf16.vlgmr.msra.gmra.mrb[0].mxu0 %vm251_vm4, %v250_v37 }
 0x16f   : > { %v289_v39 = vpop.f32.mrb[0].mxu0 }
 0x170   : > { %v421_v40 = vpop.f32.mrb[1].mxu0  ;;  %v302_v41 = vmul.f32 %v402_v38, %v289_v39 }
 0x171   : > { %v292_v42 = vpop.f32.mrb[2].mxu0 }
 0x172   : > { %303 = vadd.xlane.f32.xlu0 %v302_v41  ;;  %v422_v43 = vpop.f32.mrb[3].mxu0  ;;  %v305_v44 = vmul.f32 %v302_v41, %v289_v39 }
 0x174   : > { %306 = vadd.xlane.f32.xlu1 %v305_v44 }
 0x1ff   : > { %v304_v46 = vpop.xlane.xlu0 %303 }
 0x200   : > { %v308_v47 = vmul.f32 0.015625, %v304_v46 }
 0x201   : > { %v307_v48 = vpop.xlane.xlu1 %306 }
 0x202   : > { %v310_v49 = vmul.f32 %v308_v47, %v308_v47  ;;  %v309_v50 = vmul.f32 0.015625, %v307_v48 }
 0x204   : > { %v311_v51 = vsub.f32 %v309_v50, %v310_v49 }
 0x206   : > { %v313_v52 = vadd.f32 1e-05, %v311_v51 }
 0x208   : > { %472 = vrsqrt.f32 %v313_v52 }
 0x212   : > { %v473_v55 = vpop.eup %472 }
 0x213   : > { %v315_v56 = vmul.f32 %v473_v55, %v312_v54 }
 0x215   : > { %324 = vperm.xlu1 %469, %v315_v56   ;;  %v316_v57 = vmul.f32 %v315_v56, %v308_v47 }
 0x217   : > { %318 = vrot.lane.b32.xlu0 %v316_v57, %s489_s30 }
 0x289   : > { %v319_v58 = vpop.permute.xlu0 %318 }
 0x28a   : > { %v321_v59 = vsub.f32 %v312_v54, %v319_v58 }
 0x28c   : > { %330 = vperm.xlu0 %470, %v321_v59  }
 0x294   : > { %v325_v60 = vpop.permute.xlu1 %324 }
 0x295   : > { %v327_v61 = vmul.f32 %v325_v60, %v289_v39 }
 0x30b   : > { %v331_v62 = vpop.permute.xlu0 %330 }
 0x30c   : > { %v333_v63 = vadd.f32 %v331_v62, %v327_v61 }
 0x30e   : > { %vm334_vm5 = vcmp.ge.f32.partialorder %v333_v63, 0.0  ;;  %v335_v0 = vmul.f32 0.01, %v333_v63 }
 0x310   : > { %v336_v1 = vsel %vm334_vm5, %v333_v63, %v335_v0 }
 0x311   : > { %v337_v2 = vpack.c.bf16 %v336_v1, %v336_v1 }
 0x313   : > { %338 = vst [vmem:[%s195_s8] sm:$0xf] %v337_v2 }
 0x314 PF: > { %s14_s15 = sadd.s32 1, %s480_s15  }
 0x315   : > { %p11_p4 = scmp.ge.s32.totalorder %s14_s15, 4  }
 0x317   :  { %13 = sbr.rel (!%p11_p4) target bundleno = 1 (0x1), region = 66 }

// kernel: residual_layer_forward.7
= control target key start
LH: loop header
LB: loop body
LE: loop exit
PB: predicated region body
PF: predicated region fallthrough
CT: control target
= control target key end

     0   :  { %s618_s18 = smov 0   ;;  %s657_s0 = inlined_call_operand.vmem [shape: bf16[2,8,256], index: 0, kind: input, shape index: {}]   ;;  %s658_s1 = inlined_call_operand.vmem [shape: bf16[8,72], index: 1, kind: input, shape index: {}]   ;;  %s659_s2 = inlined_call_operand.vmem [shape: f32[8,2], index: 2, kind: input, shape index: {}]   ;;  %s660_s3 = inlined_call_operand.vmem [shape: f32[1,128], index: 3, kind: input, shape index: {}]   ;;  %s661_s4 = inlined_call_operand.vmem [shape: bf16[2,8,128], index: 4, kind: input, shape index: {}]   ;;  %s662_s5 = inlined_call_operand.vmem [shape: bf16[2,8,128], index: 5, kind: output, shape index: {}]  }
   0x1 LB: > { %s468_s19 = sadd.s32 4294967295, %s573_s18   ;;  %p472_p0 = scmp.ge.s32.totalorder %s573_s18, 1  ;;  %s573_s18 = sphi %s618_s18, %s15_s18  }
   0x2   : > { %p196_p1 = scmp.lt.s32.totalorder %s573_s18, 3 }
   0x4   : > { %p197_p2 = pnand %p472_p0, %p196_p1 }
   0x5   : > { %p227_p3 = scmp.lt.s32.totalorder (!%p197_p2), %s468_s19, 1  ;;  %v575_v0 = vmov (!%p197_p2), 0.0   ;;  %s576_s24 = smov (!%p197_p2), 127   ;;  %vm582_vm0 = vmmov (!%p197_p2), 0   ;;  %vm250_vm1 = vcmask (!%p197_p2), 1039360   ;;  %vm264_vm2 = vcmask (!%p197_p2), 965632  }
   0x6   : > { %200 = sbr.rel (%p197_p2) target bundleno = 794 (0x31a), region = 40  ;;  %488 = vmatprep.subr.bf16.mxu0 (!%p197_p2), %v575_v0  ;;  %s577_s25 = smov (!%p197_p2), 118   ;;  %498 = vmatprep.mubr.msk.bf16.mxu0 (!%p197_p2), %vm582_vm0, %v575_v0  ;;  %vm257_vm3 = vcmask (!%p197_p2), 1031168   ;;  %vm271_vm4 = vcmask (!%p197_p2), 957440   ;;  %vm278_vm5 = vcmask (!%p197_p2), 949248   ;;  %vm285_vm6 = vcmask (!%p197_p2), 883712  }
   0x7   : > { %s578_s26 = smov (!%p197_p2), 126   ;;  %s579_s27 = smov (!%p197_p2), 117   ;;  %vm292_vm7 = vcmask (!%p197_p2), 875520   ;;  %vm299_vm8 = vcmask (!%p197_p2), 867328   ;;  %vm312_vm9 = vcmask (!%p197_p2), 1043456   ;;  %vm308_vm10 = vcmask (!%p197_p2), 588800  }
   0x8   : > { %s580_s28 = smov (!%p197_p2), 116   ;;  %s581_s29 = smov (!%p197_p2), 108   ;;  %v307_v43 = vld [vmem:[%s658_s1] sm:$0xf] (!%p197_p2)  ;;  %v585_v51 = vmov (!%p197_p2), 0   ;;  %v586_v59 = vmov (!%p197_p2), 1  }
   0x9   : > { %s583_s30 = smov (!%p197_p2), 107   ;;  %s584_s6 = smov (!%p197_p2), 106   ;;  %v478_v44 = vld [vmem:[%s660_s3] ss:$0 sm:$0xff] (!%p197_p2)  ;;  %563 = vset.pattern.permute.xlu1 (!%p197_p2), %v585_v51  ;;  %564 = vset.pattern.permute.xlu0 (!%p197_p2), %v586_v59 }
   0xa   : > { %v373_v60 = vld [vmem:[%s659_s2] sm:$0xff] (!%p197_p2)  ;;  %s587_s13 = smov (!%p197_p2), 1  }
   0xd   : > { %s664_s19 = smov (!%p227_p3, %s468_s19), 1 }
   0xe   : > { %s481_s20 = sshll.u32 %s664_s19, 3  ;;  %s475_s14 = sshll.u32 %s664_s19, 2 }
   0xf   : > { %s231_s23 = scalar_lea.vmem %s657_s0, %s481_s20  ;;  %s235_s17 = scalar_lea.vmem %s661_s4, %s475_s14 }
  0x10   : > { %v241_v1 = vld [vmem:[%s231_s23] sm:$0xff]  ;;  %s239_s22 = scalar_lea.vmem %s662_s5, %s475_s14 }
  0x11   : > { %v242_v2 = vunpack.c.l.bf16 %v241_v1  ;;  %v243_v3 = vunpack.c.h.bf16 %v241_v1 }
  0x13   : > { %v523_v4 = vpack.i.bf16 %v243_v3, %v242_v2  ;;  %v395_v3 = vld [vmem:[%s235_s17] sm:$0xf] }
  0x15   : > { %524 = vrot.lane.b32.xlu0 %v523_v4, %s576_s24  ;;  %534 = vrot.lane.b32.xlu1 %v523_v4, %s577_s25 }
  0x19   : > { %529 = vrot.lane.b32.xlu0 %v523_v4, %s578_s26  ;;  %539 = vrot.lane.b32.xlu1 %v523_v4, %s579_s27 }
  0x1d   : > { %544 = vrot.lane.b32.xlu0 %v523_v4, %s580_s28  ;;  %549 = vrot.lane.b32.xlu1 %v523_v4, %s581_s29 }
  0x21   : > { %554 = vrot.lane.b32.xlu0 %v523_v4, %s583_s30  ;;  %559 = vrot.lane.b32.xlu1 %v523_v4, %s584_s6 }
  0x87   : > { %v525_v5 = vpop.permute.xlu0 %524  ;;  %v535_v6 = vpop.permute.xlu1 %534 }
  0x88   : > { %v527_v7 = vunpack.i.h.bf16 %v525_v5  ;;  %v526_v8 = vunpack.i.l.bf16 %v525_v5  ;;  %v537_v9 = vunpack.i.h.bf16 %v535_v6  ;;  %v536_v10 = vunpack.i.l.bf16 %v535_v6 }
  0x89   : > { %v396_v5 = vunpack.c.l.bf16 %v395_v3 }
  0x8a   : > { %v251_v11 = vsel %vm250_vm1, %v526_v8, %v527_v7  ;;  %v265_v15 = vsel %vm264_vm2, %v536_v10, %v537_v9 }
  0x8b   : > { %v530_v12 = vpop.permute.xlu0 %529  ;;  %v302_v13 = vpack.c.bf16 %v251_v11, %v242_v2  ;;  %v540_v14 = vpop.permute.xlu1 %539 }
  0x8c   : > { %v532_v16 = vunpack.i.h.bf16 %v530_v12  ;;  %v531_v17 = vunpack.i.l.bf16 %v530_v12  ;;  %v542_v18 = vunpack.i.h.bf16 %v540_v14  ;;  %v541_v19 = vunpack.i.l.bf16 %v540_v14 }
  0x8d   : > { %489 = vmatpush3.bf16.msra.mxu0 %v302_v13 }
  0x8e   : > { %490 = vmatprep.subr.bf16.mxu0 %v575_v0  ;;  %v258_v20 = vsel %vm257_vm3, %v531_v17, %v532_v16  ;;  %v272_v24 = vsel %vm271_vm4, %v541_v19, %v542_v18 }
  0x8f   : > { %v545_v21 = vpop.permute.xlu0 %544  ;;  %v303_v22 = vpack.c.bf16 %v265_v15, %v258_v20  ;;  %v550_v23 = vpop.permute.xlu1 %549 }
  0x90   : > { %v547_v25 = vunpack.i.h.bf16 %v545_v21  ;;  %v546_v26 = vunpack.i.l.bf16 %v545_v21  ;;  %v552_v27 = vunpack.i.h.bf16 %v550_v23  ;;  %v551_v28 = vunpack.i.l.bf16 %v550_v23 }
  0x91   : > { %491 = vmatpush3.bf16.msra.mxu0 %v303_v22 }
  0x92   : > { %492 = vmatprep.subr.bf16.mxu0 %v575_v0  ;;  %v279_v29 = vsel %vm278_vm5, %v546_v26, %v547_v25  ;;  %v286_v33 = vsel %vm285_vm6, %v551_v28, %v552_v27 }
  0x93   : > { %v555_v30 = vpop.permute.xlu0 %554  ;;  %v304_v31 = vpack.c.bf16 %v279_v29, %v272_v24  ;;  %v560_v32 = vpop.permute.xlu1 %559 }
  0x94   : > { %v557_v34 = vunpack.i.h.bf16 %v555_v30  ;;  %v556_v35 = vunpack.i.l.bf16 %v555_v30  ;;  %v562_v36 = vunpack.i.h.bf16 %v560_v32  ;;  %v561_v37 = vunpack.i.l.bf16 %v560_v32 }
  0x95   : > { %493 = vmatpush3.bf16.msra.mxu0 %v304_v31 }
  0x96   : > { %494 = vmatprep.subr.bf16.mxu0 %v575_v0  ;;  %v293_v38 = vsel %vm292_vm7, %v556_v35, %v557_v34  ;;  %v300_v39 = vsel %vm299_vm8, %v561_v37, %v562_v36 }
  0x97   : > { %v305_v40 = vpack.c.bf16 %v293_v38, %v286_v33  ;;  %v306_v41 = vpack.c.bf16 %v300_v39, %v300_v39 }
  0x99   : > { %495 = vmatpush3.bf16.msra.mxu0 %v305_v40  ;;  %v314_v42 = vsel %vm312_vm9, %v306_v41, 0 }
  0x9a   : > { %496 = vmatprep.subr.bf16.mxu0 %v575_v0 }
  0x9d   : > { %497 = vmatpush3.bf16.msra.mxu0 %v314_v42 }
  0xa0   : > { %499 = vmatmul.mubr.msk.bf16.vlgmr.msra.gmra.mrb[0].mxu0 %vm308_vm10, %v307_v43 }
 0x173   : > { %v350_v45 = vpop.f32.mrb[0].mxu0 }
 0x174   : > { %v500_v46 = vpop.f32.mrb[1].mxu0  ;;  %v363_v47 = vmul.f32 %v478_v44, %v350_v45 }
 0x175   : > { %v353_v48 = vpop.f32.mrb[2].mxu0 }
 0x176   : > { %364 = vadd.xlane.f32.xlu0 %v363_v47  ;;  %v501_v49 = vpop.f32.mrb[3].mxu0  ;;  %v366_v50 = vmul.f32 %v363_v47, %v350_v45 }
 0x178   : > { %367 = vadd.xlane.f32.xlu1 %v366_v50 }
 0x203   : > { %v365_v52 = vpop.xlane.xlu0 %364 }
 0x204   : > { %v369_v53 = vmul.f32 0.015625, %v365_v52 }
 0x205   : > { %v368_v54 = vpop.xlane.xlu1 %367 }
 0x206   : > { %v371_v55 = vmul.f32 %v369_v53, %v369_v53  ;;  %v370_v56 = vmul.f32 0.015625, %v368_v54 }
 0x208   : > { %v372_v57 = vsub.f32 %v370_v56, %v371_v55 }
 0x20a   : > { %v374_v58 = vadd.f32 1e-05, %v372_v57 }
 0x20c   : > { %565 = vrsqrt.f32 %v374_v58 }
 0x216   : > { %v566_v61 = vpop.eup %565 }
 0x217   : > { %v376_v62 = vmul.f32 %v566_v61, %v373_v60 }
 0x219   : > { %385 = vperm.xlu1 %563, %v376_v62   ;;  %v377_v63 = vmul.f32 %v376_v62, %v369_v53 }
 0x21b   : > { %379 = vrot.lane.b32.xlu0 %v377_v63, %s587_s13 }
 0x28d   : > { %v380_v0 = vpop.permute.xlu0 %379 }
 0x28e   : > { %v382_v1 = vsub.f32 %v373_v60, %v380_v0 }
 0x290   : > { %391 = vperm.xlu0 %564, %v382_v1  }
 0x298   : > { %v386_v2 = vpop.permute.xlu1 %385 }
 0x299   : > { %v388_v4 = vmul.f32 %v386_v2, %v350_v45 }
 0x30f   : > { %v392_v6 = vpop.permute.xlu0 %391 }
 0x310   : > { %v394_v7 = vadd.f32 %v392_v6, %v388_v4 }
 0x312   : > { %v397_v8 = vadd.f32 %v396_v5, %v394_v7 }
 0x314   : > { %vm398_vm11 = vcmp.ge.f32.partialorder %v397_v8, 0.0  ;;  %v399_v9 = vmul.f32 0.01, %v397_v8 }
 0x316   : > { %v400_v10 = vsel %vm398_vm11, %v397_v8, %v399_v9 }
 0x317   : > { %v401_v11 = vpack.c.bf16 %v400_v10, %v400_v10 }
 0x319   : > { %402 = vst [vmem:[%s239_s22] sm:$0xf] %v401_v11 }
 0x31a PF: > { %s15_s18 = sadd.s32 1, %s573_s18  }
 0x31b   : > { %p12_p4 = scmp.ge.s32.totalorder %s15_s18, 4  }
 0x31d   :  { %14 = sbr.rel (!%p12_p4) target bundleno = 1 (0x1), region = 73 }

// kernel: residual_layer_forward.8
= control target key start
LH: loop header
LB: loop body
LE: loop exit
PB: predicated region body
PF: predicated region fallthrough
CT: control target
= control target key end

     0   :  { %s553_s15 = smov 0   ;;  %s589_s0 = inlined_call_operand.vmem [shape: bf16[2,8,256], index: 0, kind: input, shape index: {}]   ;;  %s590_s1 = inlined_call_operand.vmem [shape: bf16[8,72], index: 1, kind: input, shape index: {}]   ;;  %s591_s2 = inlined_call_operand.vmem [shape: f32[8,2], index: 2, kind: input, shape index: {}]   ;;  %s592_s3 = inlined_call_operand.vmem [shape: f32[1,128], index: 3, kind: input, shape index: {}]   ;;  %s593_s4 = inlined_call_operand.vmem [shape: bf16[2,8,128], index: 4, kind: output, shape index: {}]  }
   0x1 LB: > { %s409_s16 = sadd.s32 4294967295, %s513_s15   ;;  %p413_p0 = scmp.ge.s32.totalorder %s513_s15, 1  ;;  %s513_s15 = sphi %s553_s15, %s14_s15  }
   0x2   : > { %p162_p1 = scmp.lt.s32.totalorder %s513_s15, 3 }
   0x4   : > { %p163_p2 = pnand %p413_p0, %p162_p1 }
   0x5   : > { %p187_p3 = scmp.lt.s32.totalorder (!%p163_p2), %s409_s16, 1  ;;  %v515_v0 = vmov (!%p163_p2), 0.0   ;;  %s516_s21 = smov (!%p163_p2), 127   ;;  %vm522_vm0 = vmmov (!%p163_p2), 0   ;;  %vm206_vm1 = vcmask (!%p163_p2), 1039360   ;;  %vm220_vm2 = vcmask (!%p163_p2), 965632  }
   0x6   : > { %166 = sbr.rel (%p163_p2) target bundleno = 792 (0x318), region = 36  ;;  %428 = vmatprep.subr.bf16.mxu0 (!%p163_p2), %v515_v0  ;;  %s517_s22 = smov (!%p163_p2), 118   ;;  %438 = vmatprep.mubr.msk.bf16.mxu0 (!%p163_p2), %vm522_vm0, %v515_v0  ;;  %vm213_vm3 = vcmask (!%p163_p2), 1031168   ;;  %vm227_vm4 = vcmask (!%p163_p2), 957440   ;;  %vm234_vm5 = vcmask (!%p163_p2), 949248   ;;  %vm241_vm6 = vcmask (!%p163_p2), 883712  }
   0x7   : > { %s518_s23 = smov (!%p163_p2), 126   ;;  %s519_s24 = smov (!%p163_p2), 117   ;;  %vm248_vm7 = vcmask (!%p163_p2), 875520   ;;  %vm255_vm8 = vcmask (!%p163_p2), 867328   ;;  %vm268_vm9 = vcmask (!%p163_p2), 1043456   ;;  %vm264_vm10 = vcmask (!%p163_p2), 588800  }
   0x8   : > { %s520_s25 = smov (!%p163_p2), 116   ;;  %s521_s26 = smov (!%p163_p2), 108   ;;  %v263_v43 = vld [vmem:[%s590_s1] sm:$0xf] (!%p163_p2)  ;;  %v525_v51 = vmov (!%p163_p2), 0   ;;  %v526_v59 = vmov (!%p163_p2), 1  }
   0x9   : > { %s523_s27 = smov (!%p163_p2), 107   ;;  %s524_s28 = smov (!%p163_p2), 106   ;;  %v418_v44 = vld [vmem:[%s592_s3] ss:$0 sm:$0xff] (!%p163_p2)  ;;  %503 = vset.pattern.permute.xlu1 (!%p163_p2), %v525_v51  ;;  %504 = vset.pattern.permute.xlu0 (!%p163_p2), %v526_v59 }
   0xa   : > { %v329_v60 = vld [vmem:[%s591_s2] sm:$0xff] (!%p163_p2)  ;;  %s527_s9 = smov (!%p163_p2), 1  }
   0xd   : > { %s595_s16 = smov (!%p187_p3, %s409_s16), 1 }
   0xe   : > { %s421_s17 = sshll.u32 %s595_s16, 3  ;;  %s416_s10 = sshll.u32 %s595_s16, 2 }
   0xf   : > { %s191_s20 = scalar_lea.vmem %s589_s0, %s421_s17  ;;  %s195_s13 = scalar_lea.vmem %s593_s4, %s416_s10 }
  0x10   : > { %v197_v1 = vld [vmem:[%s191_s20] sm:$0xff] }
  0x11   : > { %v198_v2 = vunpack.c.l.bf16 %v197_v1  ;;  %v199_v3 = vunpack.c.h.bf16 %v197_v1 }
  0x13   : > { %v463_v4 = vpack.i.bf16 %v199_v3, %v198_v2 }
  0x15   : > { %464 = vrot.lane.b32.xlu0 %v463_v4, %s516_s21  ;;  %474 = vrot.lane.b32.xlu1 %v463_v4, %s517_s22 }
  0x19   : > { %469 = vrot.lane.b32.xlu0 %v463_v4, %s518_s23  ;;  %479 = vrot.lane.b32.xlu1 %v463_v4, %s519_s24 }
  0x1d   : > { %484 = vrot.lane.b32.xlu0 %v463_v4, %s520_s25  ;;  %489 = vrot.lane.b32.xlu1 %v463_v4, %s521_s26 }
  0x21   : > { %494 = vrot.lane.b32.xlu0 %v463_v4, %s523_s27  ;;  %499 = vrot.lane.b32.xlu1 %v463_v4, %s524_s28 }
  0x87   : > { %v465_v5 = vpop.permute.xlu0 %464  ;;  %v475_v6 = vpop.permute.xlu1 %474 }
  0x88   : > { %v467_v7 = vunpack.i.h.bf16 %v465_v5  ;;  %v466_v8 = vunpack.i.l.bf16 %v465_v5  ;;  %v477_v9 = vunpack.i.h.bf16 %v475_v6  ;;  %v476_v10 = vunpack.i.l.bf16 %v475_v6 }
  0x8a   : > { %v207_v11 = vsel %vm206_vm1, %v466_v8, %v467_v7  ;;  %v221_v15 = vsel %vm220_vm2, %v476_v10, %v477_v9 }
  0x8b   : > { %v470_v12 = vpop.permute.xlu0 %469  ;;  %v258_v13 = vpack.c.bf16 %v207_v11, %v198_v2  ;;  %v480_v14 = vpop.permute.xlu1 %479 }
  0x8c   : > { %v472_v16 = vunpack.i.h.bf16 %v470_v12  ;;  %v471_v17 = vunpack.i.l.bf16 %v470_v12  ;;  %v482_v18 = vunpack.i.h.bf16 %v480_v14  ;;  %v481_v19 = vunpack.i.l.bf16 %v480_v14 }
  0x8d   : > { %429 = vmatpush3.bf16.msra.mxu0 %v258_v13 }
  0x8e   : > { %430 = vmatprep.subr.bf16.mxu0 %v515_v0  ;;  %v214_v20 = vsel %vm213_vm3, %v471_v17, %v472_v16  ;;  %v228_v24 = vsel %vm227_vm4, %v481_v19, %v482_v18 }
  0x8f   : > { %v485_v21 = vpop.permute.xlu0 %484  ;;  %v259_v22 = vpack.c.bf16 %v221_v15, %v214_v20  ;;  %v490_v23 = vpop.permute.xlu1 %489 }
  0x90   : > { %v487_v25 = vunpack.i.h.bf16 %v485_v21  ;;  %v486_v26 = vunpack.i.l.bf16 %v485_v21  ;;  %v492_v27 = vunpack.i.h.bf16 %v490_v23  ;;  %v491_v28 = vunpack.i.l.bf16 %v490_v23 }
  0x91   : > { %431 = vmatpush3.bf16.msra.mxu0 %v259_v22 }
  0x92   : > { %432 = vmatprep.subr.bf16.mxu0 %v515_v0  ;;  %v235_v29 = vsel %vm234_vm5, %v486_v26, %v487_v25  ;;  %v242_v33 = vsel %vm241_vm6, %v491_v28, %v492_v27 }
  0x93   : > { %v495_v30 = vpop.permute.xlu0 %494  ;;  %v260_v31 = vpack.c.bf16 %v235_v29, %v228_v24  ;;  %v500_v32 = vpop.permute.xlu1 %499 }
  0x94   : > { %v497_v34 = vunpack.i.h.bf16 %v495_v30  ;;  %v496_v35 = vunpack.i.l.bf16 %v495_v30  ;;  %v502_v36 = vunpack.i.h.bf16 %v500_v32  ;;  %v501_v37 = vunpack.i.l.bf16 %v500_v32 }
  0x95   : > { %433 = vmatpush3.bf16.msra.mxu0 %v260_v31 }
  0x96   : > { %434 = vmatprep.subr.bf16.mxu0 %v515_v0  ;;  %v249_v38 = vsel %vm248_vm7, %v496_v35, %v497_v34  ;;  %v256_v39 = vsel %vm255_vm8, %v501_v37, %v502_v36 }
  0x97   : > { %v261_v40 = vpack.c.bf16 %v249_v38, %v242_v33  ;;  %v262_v41 = vpack.c.bf16 %v256_v39, %v256_v39 }
  0x99   : > { %435 = vmatpush3.bf16.msra.mxu0 %v261_v40  ;;  %v270_v42 = vsel %vm268_vm9, %v262_v41, 0 }
  0x9a   : > { %436 = vmatprep.subr.bf16.mxu0 %v515_v0 }
  0x9d   : > { %437 = vmatpush3.bf16.msra.mxu0 %v270_v42 }
  0xa0   : > { %439 = vmatmul.mubr.msk.bf16.vlgmr.msra.gmra.mrb[0].mxu0 %vm264_vm10, %v263_v43 }
 0x173   : > { %v306_v45 = vpop.f32.mrb[0].mxu0 }
 0x174   : > { %v440_v46 = vpop.f32.mrb[1].mxu0  ;;  %v319_v47 = vmul.f32 %v418_v44, %v306_v45 }
 0x175   : > { %v309_v48 = vpop.f32.mrb[2].mxu0 }
 0x176   : > { %320 = vadd.xlane.f32.xlu0 %v319_v47  ;;  %v441_v49 = vpop.f32.mrb[3].mxu0  ;;  %v322_v50 = vmul.f32 %v319_v47, %v306_v45 }
 0x178   : > { %323 = vadd.xlane.f32.xlu1 %v322_v50 }
 0x203   : > { %v321_v52 = vpop.xlane.xlu0 %320 }
 0x204   : > { %v325_v53 = vmul.f32 0.015625, %v321_v52 }
 0x205   : > { %v324_v54 = vpop.xlane.xlu1 %323 }
 0x206   : > { %v327_v55 = vmul.f32 %v325_v53, %v325_v53  ;;  %v326_v56 = vmul.f32 0.015625, %v324_v54 }
 0x208   : > { %v328_v57 = vsub.f32 %v326_v56, %v327_v55 }
 0x20a   : > { %v330_v58 = vadd.f32 1e-05, %v328_v57 }
 0x20c   : > { %505 = vrsqrt.f32 %v330_v58 }
 0x216   : > { %v506_v61 = vpop.eup %505 }
 0x217   : > { %v332_v62 = vmul.f32 %v506_v61, %v329_v60 }
 0x219   : > { %341 = vperm.xlu1 %503, %v332_v62   ;;  %v333_v63 = vmul.f32 %v332_v62, %v325_v53 }
 0x21b   : > { %335 = vrot.lane.b32.xlu0 %v333_v63, %s527_s9 }
 0x28d   : > { %v336_v0 = vpop.permute.xlu0 %335 }
 0x28e   : > { %v338_v1 = vsub.f32 %v329_v60, %v336_v0 }
 0x290   : > { %347 = vperm.xlu0 %504, %v338_v1  }
 0x298   : > { %v342_v2 = vpop.permute.xlu1 %341 }
 0x299   : > { %v344_v3 = vmul.f32 %v342_v2, %v306_v45 }
 0x30f   : > { %v348_v4 = vpop.permute.xlu0 %347 }
 0x310   : > { %v350_v5 = vadd.f32 %v348_v4, %v344_v3 }
 0x312   : > { %vm351_vm11 = vcmp.ge.f32.partialorder %v350_v5, 0.0  ;;  %v352_v6 = vmul.f32 0.01, %v350_v5 }
 0x314   : > { %v353_v7 = vsel %vm351_vm11, %v350_v5, %v352_v6 }
 0x315   : > { %v354_v8 = vpack.c.bf16 %v353_v7, %v353_v7 }
 0x317   : > { %355 = vst [vmem:[%s195_s13] sm:$0xf] %v354_v8 }
 0x318 PF: > { %s14_s15 = sadd.s32 1, %s513_s15  }
 0x319   : > { %p11_p4 = scmp.ge.s32.totalorder %s14_s15, 4  }
 0x31b   :  { %13 = sbr.rel (!%p11_p4) target bundleno = 1 (0x1), region = 66 }

</bundles_post_ra>
